<compile_context>
chip_gen: v7x
topology: tpu7x:2x2x1
jax: 0.10.0
libtpu: 0.0.40
codegen_flags: <defaults>
</compile_context>

<pallas_src>
import functools

import jax
import jax.numpy as jnp
from jax.experimental import pallas as pl
from jax.experimental.pallas import tpu as pltpu


def _round_up(x, m):
    return ((x + m - 1) // m) * m


def _vmem_capacity_bytes():
    """Generation-aware VMEM size; conservative 64 MiB (v7x) fallback."""
    try:
        info = pltpu.get_tpu_info()
        cap = getattr(info, "vmem_capacity_bytes", None)
        if cap:
            return int(cap)
    except Exception:
        pass
    return 64 << 20


def _mae_kernel(pred_ref, labels_ref, out_ref, *, row_tile, n_total):
    pred = pred_ref[...].astype(jnp.float32)            # (TN, C)
    labels = labels_ref[...]                             # (TN, 1) int32

    # Row-wise softmax pieces over the class (lane) axis -- never
    # materializing the normalized (TN, C) softmax matrix.
    row_max = jnp.max(pred, axis=1, keepdims=True)        # (TN, 1)
    e = jnp.exp(pred - row_max)                           # (TN, C)
    denom = jnp.sum(e, axis=1, keepdims=True)             # (TN, 1)

    # e[i, labels[i]] via masked lane reduction (no one-hot cast+mul).
    col_ids = jax.lax.broadcasted_iota(jnp.int32, pred.shape, 1)
    picked_e = jnp.sum(jnp.where(col_ids == labels, e, 0.0),
                       axis=1, keepdims=True)             # (TN, 1)
    picked = picked_e / denom                              # (TN, 1)

    # Mask out padded / out-of-range rows (ragged tail of the grid).
    row_ids = (pl.program_id(0) * row_tile
               + jax.lax.broadcasted_iota(jnp.int32, (row_tile, 1), 0))
    valid = row_ids < n_total
    mae = jnp.where(valid, 1.0 - picked, 0.0)              # (TN, 1)

    # Lane-dense, (8,128)-aligned partial-sum write; wrapper reduces tiles.
    partial = jnp.sum(mae)
    out_ref[...] = jnp.full((1, 8, 128), partial, dtype=jnp.float32)


def _pick_row_tile(n, c, itemsize, *, target_pred_bytes, vmem_block_budget):
    """Row tile targeting multi-MiB pred blocks within a VMEM block budget."""
    n_pad8 = _round_up(max(n, 1), 8)
    pred_row_hbm = c * itemsize                       # HBM bytes per row
    pred_row_vmem = _round_up(c, 128) * itemsize      # VMEM bytes/row (lane-pad)
    label_row_vmem = 128 * 4                          # (TN,1) int32 lane-pads to 128

    tile = max(8, target_pred_bytes // pred_row_hbm)
    vmem_cap = max(8, vmem_block_budget // (2 * (pred_row_vmem + label_row_vmem)))
    tile = min(tile, vmem_cap, n_pad8)
    # Keep >= 2 grid steps so v7x can shard the parallel axis on both TCs.
    tile = min(tile, _round_up(pl.cdiv(n, 2), 8))
    return max(8, (tile // 8) * 8)


def mean_absolute_error(pred, labels, num_classes, scale=20.0, row_tile=None):
    """pred: (N, num_classes) float32/bfloat16, labels: (N,) int -> scalar f32."""
    n, c = pred.shape
    assert c == num_classes

    itemsize = jnp.dtype(pred.dtype).itemsize
    vmem_capacity = _vmem_capacity_bytes()
    block_budget = int(0.45 * vmem_capacity)          # double-buffered blocks
    if row_tile is None:
        row_tile = _pick_row_tile(n, c, itemsize,
                                  target_pred_bytes=8 << 20,
                                  vmem_block_budget=block_budget)

    labels2d = labels.astype(jnp.int32).reshape(n, 1)
    num_tiles = pl.cdiv(n, row_tile)

    kernel = functools.partial(_mae_kernel, row_tile=row_tile, n_total=n)

    # VMEM request: double-buffered pred + labels blocks (both lane-padded),
    # output blocks, plus headroom; capped at 90% of physical VMEM.
    pred_row_vmem = _round_up(c, 128) * itemsize
    block_bytes = 2 * row_tile * (pred_row_vmem + 128 * 4)
    vmem_limit = block_bytes + 2 * 8 * 128 * 4 + (4 << 20)
    vmem_limit = int(min(max(vmem_limit, 16 << 20), int(0.9 * vmem_capacity)))

    cost = pl.CostEstimate(
        flops=5 * n * c,
        transcendentals=n * c,
        bytes_accessed=n * c * itemsize + n * 4 + num_tiles * 8 * 128 * 4,
    )

    partials = pl.pallas_call(
        kernel,
        out_shape=jax.ShapeDtypeStruct((num_tiles, 8, 128), jnp.float32),
        grid_spec=pltpu.PrefetchScalarGridSpec(
            num_scalar_prefetch=0,
            grid=(num_tiles,),
            in_specs=[
                pl.BlockSpec((row_tile, c), lambda i: (i, 0)),
                pl.BlockSpec((row_tile, 1), lambda i: (i, 0)),
            ],
            out_specs=pl.BlockSpec((1, 8, 128), lambda i: (i, 0, 0)),
        ),
        compiler_params=pltpu.CompilerParams(
            dimension_semantics=("parallel",),
            vmem_limit_bytes=vmem_limit,
        ),
        cost_estimate=cost,
    )(pred, labels2d)

    # Final reduction / scale / mean in the wrapper (keeps the grid parallel).
    total = jnp.sum(partials[:, 0, 0])
    return scale * total / n


if __name__ == "__main__":
    num_classes = 32
    scale = 20.0
    n = 20  # deliberately NOT a multiple of 8 to exercise ragged-tail masking

    key = jax.random.PRNGKey(0)
    k_pred, k_lab = jax.random.split(key)
    pred = jax.random.normal(k_pred, (n, num_classes), dtype=jnp.float32)
    labels = jax.random.randint(k_lab, (n,), 0, num_classes, dtype=jnp.int32)

    out = mean_absolute_error(pred, labels, num_classes, scale=scale)
    out = jax.block_until_ready(out)

    # Pure-JAX reference check.
    p_ref = jax.nn.softmax(pred, axis=1)
    picked_ref = p_ref[jnp.arange(n), labels]
    ref = scale * jnp.mean(1.0 - picked_ref)
    assert jnp.allclose(out, ref, rtol=1e-5, atol=1e-5), (out, ref)

    print("KERNEL_OK")
</pallas_src>

<mosaic_0001>
module attributes {stable_mosaic.version = 11 : i64} {
  func.func @_mae_kernel(%arg0: i32, %arg1: memref<16x32xf32, #tpu.memory_space<vmem>>, %arg2: memref<16x1xi32, #tpu.memory_space<vmem>>, %arg3: memref<1x8x128xf32, #tpu.memory_space<vmem>>) attributes {dimension_semantics = [#tpu.dimension_semantics<parallel>], iteration_bounds = array<i64: 2>, scalar_prefetch = 0 : i64, scratch_operands = 0 : i64, tpu.core_type = #tpu.core_type<tc>, window_params = [{transform_indices = @transform_0, window_bounds = array<i64: 16, 32>}, {transform_indices = @transform_1, window_bounds = array<i64: 16, 1>}, {transform_indices = @transform_2, window_bounds = array<i64: 1, 8, 128>}]} {
    %c0 = arith.constant 0 : index
    %c0_0 = arith.constant 0 : index
    %0 = vector.load %arg1[%c0, %c0_0] : memref<16x32xf32, #tpu.memory_space<vmem>>, vector<16x32xf32>
    %c0_1 = arith.constant 0 : index
    %c0_2 = arith.constant 0 : index
    %1 = vector.load %arg2[%c0_1, %c0_2] : memref<16x1xi32, #tpu.memory_space<vmem>>, vector<16x1xi32>
    %cst = arith.constant dense<0xFF800000> : vector<16xf32>
    %2 = vector.multi_reduction <maximumf>, %0, %cst [1] : vector<16x32xf32> to vector<16xf32>
    %3 = vector.shape_cast %2 : vector<16xf32> to vector<16x1xf32>
    %4 = vector.broadcast %3 : vector<16x1xf32> to vector<16x32xf32>
    %5 = arith.subf %0, %4 : vector<16x32xf32>
    %6 = math.exp %5 : vector<16x32xf32>
    %cst_3 = arith.constant dense<0.000000e+00> : vector<16xf32>
    %7 = vector.multi_reduction <add>, %6, %cst_3 [1] : vector<16x32xf32> to vector<16xf32>
    %8 = vector.shape_cast %7 : vector<16xf32> to vector<16x1xf32>
    %9 = tpu.iota {dimensions = array<i32: 1>} : vector<16x32xi32>
    %10 = vector.broadcast %1 : vector<16x1xi32> to vector<16x32xi32>
    %11 = arith.cmpi eq, %9, %10 : vector<16x32xi32>
    %cst_4 = arith.constant 0.000000e+00 : f32
    %12 = vector.broadcast %cst_4 : f32 to vector<16x32xf32>
    %13 = arith.select %11, %6, %12 : vector<16x32xi1>, vector<16x32xf32>
    %cst_5 = arith.constant dense<0.000000e+00> : vector<16xf32>
    %14 = vector.multi_reduction <add>, %13, %cst_5 [1] : vector<16x32xf32> to vector<16xf32>
    %15 = vector.shape_cast %14 : vector<16xf32> to vector<16x1xf32>
    %16 = arith.divf %15, %8 : vector<16x1xf32>
    %c16_i32 = arith.constant 16 : i32
    %17 = arith.muli %arg0, %c16_i32 : i32
    %18 = tpu.iota {dimensions = array<i32: 0>} : vector<16x1xi32>
    %19 = vector.broadcast %17 : i32 to vector<16x1xi32>
    %20 = arith.addi %19, %18 : vector<16x1xi32>
    %c20_i32 = arith.constant 20 : i32
    %21 = vector.broadcast %c20_i32 : i32 to vector<16x1xi32>
    %22 = arith.cmpi slt, %20, %21 : vector<16x1xi32>
    %cst_6 = arith.constant 1.000000e+00 : f32
    %23 = vector.broadcast %cst_6 : f32 to vector<16x1xf32>
    %24 = arith.subf %23, %16 : vector<16x1xf32>
    %cst_7 = arith.constant 0.000000e+00 : f32
    %25 = vector.broadcast %cst_7 : f32 to vector<16x1xf32>
    %26 = arith.select %22, %24, %25 : vector<16x1xi1>, vector<16x1xf32>
    %27 = vector.shape_cast %26 : vector<16x1xf32> to vector<1x16x1xf32>
    %cst_8 = arith.constant dense<0.000000e+00> : vector<1xf32>
    %28 = vector.multi_reduction <add>, %27, %cst_8 [1, 2] : vector<1x16x1xf32> to vector<1xf32>
    %29 = vector.shape_cast %28 : vector<1xf32> to vector<1x1x1xf32>
    %30 = vector.extract %29[0, 0, 0] : f32 from vector<1x1x1xf32>
    %31 = vector.broadcast %30 : f32 to vector<1x8x128xf32>
    %c0_9 = arith.constant 0 : index
    %c0_10 = arith.constant 0 : index
    %c0_11 = arith.constant 0 : index
    %32 = vector.load %arg3[%c0_9, %c0_10, %c0_11] : memref<1x8x128xf32, #tpu.memory_space<vmem>>, vector<1x8x128xf32>
    tpu.vector_store %arg3[%c0_9, %c0_10, %c0_11], %31 {strides = array<i32>} : memref<1x8x128xf32, #tpu.memory_space<vmem>>, vector<1x8x128xf32>,
    return
  }
  func.func @transform_0(%arg0: i32) -> (i32, i32) {
    %c0_i32 = arith.constant 0 : i32
    %c0_i32_0 = arith.constant 0 : i32
    return %arg0, %c0_i32 : i32, i32
  }
  func.func @transform_1(%arg0: i32) -> (i32, i32) {
    %c0_i32 = arith.constant 0 : i32
    %c0_i32_0 = arith.constant 0 : i32
    return %arg0, %c0_i32 : i32, i32
  }
  func.func @transform_2(%arg0: i32) -> (i32, i32, i32) {
    %c0_i32 = arith.constant 0 : i32
    %c0_i32_0 = arith.constant 0 : i32
    %c0_i32_1 = arith.constant 0 : i32
    return %arg0, %c0_i32, %c0_i32_0 : i32, i32, i32
  }
}

</mosaic_0001>

<bundles_post_ra>
// kernel: tpu_custom_call.1
= control target key start
LH: loop header
LB: loop body
LE: loop exit
PB: predicated region body
PF: predicated region fallthrough
CT: control target
= control target key end

     0   :  { %7 = vsyncpa [#allocation3], 0  ;;  %s620_s0 = inlined_call_operand.vmem [shape: f32[20,32], index: 0, kind: input, shape index: {}]   ;;  %s621_s1 = inlined_call_operand.vmem [shape: s32[20,1], index: 1, kind: input, shape index: {}]   ;;  %s622_s2 = inlined_call_operand.hbm [shape: f32[2,8,128], index: 2, kind: output, shape index: {}]  }
   0x1   :  { %9 = vsyncpa [#allocation3 + $0x1], 0  ;;  %s511_s9 = smov 0   ;;  %s513_s10 = smov 0  }
   0x2   :  { %s515_s11 = smov 0   ;;  %s517_s12 = smov 0  }
   0x3 LB: > { %s532_s13 = sadd.s32 4294967295, %s492_s12   ;;  %s364_s14 = sadd.s32 4294967294, %s492_s12   ;;  %s492_s12 = sphi %s517_s12, %s628_s12   ;;  %s488_s11 = sphi %s515_s11, %s627_s11   ;;  %s484_s10 = sphi %s513_s10, %s626_s10   ;;  %s480_s9 = sphi %s511_s9, %s625_s9  }
   0x4   : > { %s536_s15 = sadd.s32 1, %s492_s12   ;;  %s74_s16 = sadd.s32 1, %s488_s11 }
   0x5   : > { %s71_s17 = ssub.s32 %s492_s12, %s536_s15  ;;  %p84_p0 = scmp.ne.s32.totalorder %s488_s11, %s484_s10 }
   0x6   : > { %p72_p1 = scmp.eq.s32.totalorder %s71_s17, 0  ;;  %p85_p2 = scmp.eq.s32.totalorder %s532_s13, 1 }
   0x7   : > { %p90_p3 = scmp.ne.s32.totalorder %s484_s10, %s480_s9  ;;  %p91_p4 = scmp.eq.s32.totalorder %s364_s14, 1 }
   0x8   : > { %s547_s18 = scalar_select %p72_p1, %s488_s11, %s74_s16  }
   0x9   : > { %p549_p5 = por %p85_p2, %p84_p0  ;;  %p553_p6 = por %p91_p4, %p90_p3 }
   0xa   : > { %p367_p7 = scmp.ge.s32.totalorder %s492_s12, 1  ;;  %p143_p8 = scmp.lt.s32.totalorder %s492_s12, 3 }
   0xc   : > { %p144_p9 = pnand %p367_p7, %p143_p8 }
   0xd   : > { %s369_s21 = sshll.u32 (!%p144_p9), %s532_s13, 1  ;;  %v494_v0 = vmov (!%p144_p9), 0   ;;  %vm210_vm0 = vcmask (!%p144_p9), 261120   ;;  %v229_v12 = vlaneseq (!%p144_p9)  ;;  %s373_s29 = sshll.u32 (!%p144_p9), %s532_s13, 4  ;;  %vm264_vm5 = vcmask (!%p144_p9), 7168  }
   0xe   : > { %147 = sbr.rel (%p144_p9) target bundleno = 568 (0x238), region = 28  ;;  %p183_p10 = scmp.lt.s32.totalorder (!%p144_p9), %s369_s21, 2  ;;  %420 = vset.pattern.permute.xlu1 (!%p144_p9), %v494_v0  ;;  %421 = vset.pattern.permute.xlu0 (!%p144_p9), %v494_v0  ;;  %v255_v28 = vstv (!%p144_p9), %s373_s29 }
   0xf   : > { %v230_v15 = vand.u32 (!%p144_p9), 127, %v229_v12  ;;  %v253_v27 = vshrl.u32 (!%p144_p9), %v229_v12, 7  ;;  %s175_s30 = sand.u32 (!%p144_p9), 1, %s484_s10   ;;  %s375_s6 = sshll.u32 (!%p144_p9), %s532_s13, 7 }
  0x10   : > { %s368_s3 = sshll.u32 (!%p144_p9), %s175_s30, 3  ;;  %s580_s16 = scalar_lea.hbm (!%p144_p9), %s622_s2, %s375_s6 }
  0x11   : > { %v254_v30 = vadd.s32 (!%p144_p9), 8, %v253_v27  ;;  %v256_v32 = vadd.s32 (!%p144_p9), %v255_v28, %v253_v27  ;;  %s177_s4 = scalar_lea.vmem (!%p144_p9), [#allocation2], %s368_s3  ;;  %s280_s17 = scalar_lea.sflag (!%p144_p9), [#allocation3], %s175_s30 }
  0x12   : > { %s293_s5 = sshll.u32 (!%p144_p9), %s177_s4, 4  ;;  %s495_s13 = smov (!%p144_p9), [#allocation2]   ;;  %s575_s5 = int_to_ptr.vmem [resolvable:$true] %s293_s5 }
  0x13   : > { %v257_v34 = vadd.s32 (!%p144_p9), %v255_v28, %v254_v30  ;;  %vm258_vm3 = vcmp.lt.s32.totalorder (!%p144_p9), %v256_v32, 20 }
  0x15   : > { %s630_s21 = smov (!%p183_p10, %s369_s21), 2  ;;  %vm259_vm4 = vcmp.lt.s32.totalorder %v257_v34, 20 }
  0x16   : > { %s370_s22 = sshll.u32 %s630_s21, 3  ;;  %s430_s21 = scalar_lea.vmem %s575_s5, 128 }
  0x17   : > { %s186_s25 = scalar_lea.vmem %s620_s0, %s370_s22  ;;  %s200_s28 = scalar_lea.vmem %s621_s1, %s370_s22 }
  0x18   : > { %v206_v1 = vld [vmem:[%s186_s25] sm:$0xff]  ;;  %v207_v2 = vld [vmem:[%s186_s25 + $0x8] sm:$0xff]  ;;  %p431_p11 = scmp.ne.s32.totalorder %s575_s5, %s430_s21  ;;  %s434_s22 = sshll.u32 %s495_s13, 4  ;;  %s435_s22 = int_to_ptr.vmem [resolvable:$false] %s434_s22 }
  0x19   : > { %v208_v3 = vld [vmem:[%s200_s28] sm:$0xff]  ;;  %v211_v4 = vsel %vm210_vm0, %v206_v1, -inf  ;;  %v209_v5 = vld [vmem:[%s200_s28 + $0x8] sm:$0xff]  ;;  %v214_v6 = vsel %vm210_vm0, %v207_v2, -inf  ;;  %s436_s23 = scalar_lea.vmem %s435_s22, 256  ;;  %p437_p0 = scmp.lt.s32.totalorder %s575_s5, %s435_s22 }
  0x1a   : > { %232 = vperm.xlu1 %420, %v208_v3   ;;  %212 = vmax.xlane.f32.xlu0 %v211_v4  ;;  %p432_p12 = pnand %p431_p11, %p549_p5  ;;  %p438_p1 = scmp.lt.s32.totalorder %s436_s23, %s430_s21 }
  0x1c   : > { %p433_p13 = pneg %p432_p12  ;;  %p439_p2 = por %p438_p1, %p437_p0 }
  0x1e   : > { %235 = vperm.xlu1 %420, %v209_v5   ;;  %215 = vmax.xlane.f32.xlu0 %v214_v6  ;;  %p440_p3 = pnand %p439_p2, %p433_p13 }
  0x99   : > { %v233_v14 = vpop.permute.xlu1 %232 }
  0x9a   : > { %vm237_vm1 = vcmp.eq.s32.totalorder %v230_v15, %v233_v14 }
  0x9d   : > { %v236_v17 = vpop.permute.xlu1 %235 }
  0x9e   : > { %vm238_vm2 = vcmp.eq.s32.totalorder %v230_v15, %v236_v17 }
  0xa7   : > { %v213_v7 = vpop.xlane.xlu0 %212 }
  0xa8   : > { %v217_v8 = vsub.f32 %v206_v1, %v213_v7 }
  0xaa   : > { %v219_v9 = vmul.f32 1.442695, %v217_v8 }
  0xab   : > { %v216_v10 = vpop.xlane.xlu0 %215 }
  0xac   : > { %422 = vpow2.f32 %v219_v9  ;;  %v218_v11 = vsub.f32 %v207_v2, %v216_v10 }
  0xae   : > { %v221_v13 = vmul.f32 1.442695, %v218_v11 }
  0xb0   : > { %424 = vpow2.f32 %v221_v13 }
  0xb6   : > { %v423_v16 = vpop.eup %422 }
  0xb7   : > { %v223_v18 = vsel %vm210_vm0, %v423_v16, 0.0  ;;  %v239_v19 = vsel %vm237_vm1, %v423_v16, 0.0 }
  0xb8   : > { %224 = vadd.xlane.f32.xlu0 %v223_v18  ;;  %v241_v21 = vsel %vm210_vm0, %v239_v19, 0.0 }
  0xba   : > { %v425_v20 = vpop.eup %424 }
  0xbb   : > { %v226_v22 = vsel %vm210_vm0, %v425_v20, 0.0  ;;  %v240_v23 = vsel %vm238_vm2, %v425_v20, 0.0 }
  0xbc   : > { %242 = vadd.xlane.f32.xlu0 %v241_v21  ;;  %227 = vadd.xlane.f32.xlu1 %v226_v22  ;;  %v244_v24 = vsel %vm210_vm0, %v240_v23, 0.0 }
  0xc0   : > { %245 = vadd.xlane.f32.xlu0 %v244_v24 }
 0x145   : > { %v225_v25 = vpop.xlane.xlu0 %224 }
 0x146   : > { %426 = vrcp.f32 %v225_v25 }
 0x149   : > { %v228_v26 = vpop.xlane.xlu1 %227  ;;  %v243_v29 = vpop.xlane.xlu0 %242 }
 0x14a   : > { %428 = vrcp.f32 %v228_v26 }
 0x14d   : > { %v246_v37 = vpop.xlane.xlu0 %245 }
 0x150   : > { %v427_v31 = vpop.eup %426 }
 0x151   : > { %v248_v33 = vmul.f32 %v427_v31, %v243_v29 }
 0x153   : > { %v260_v35 = vsub.f32 1.0, %v248_v33 }
 0x154   : > { %v429_v36 = vpop.eup %428 }
 0x155   : > { %v250_v38 = vmul.f32 %v429_v36, %v246_v37  ;;  %v262_v39 = vsel %vm258_vm3, %v260_v35, 0.0 }
 0x156   : > { %v265_v42 = vsel %vm264_vm5, %v262_v39, 0.0 }
 0x157   : > { %v261_v40 = vsub.f32 1.0, %v250_v38 }
 0x159   : > { %v263_v41 = vsel %vm259_vm4, %v261_v40, 0.0 }
 0x15a   : > { %v266_v43 = vsel %vm264_vm5, %v263_v41, 0.0 }
 0x15b   : > { %v267_v44 = vadd.f32 %v266_v43, %v265_v42 }
 0x15d   : > { %268 = vadd.xlane.f32.xlu0 %v267_v44 }
 0x1ea   : > { %v269_v45 = vpop.xlane.xlu0 %268 }
 0x1eb   : > { %v270_v46 = vrot.slane %v269_v45, 4 }
 0x1ed   : > { %v271_v47 = vadd.f32 %v270_v46, %v269_v45 }
 0x1ef   : > { %v272_v48 = vrot.slane %v271_v47, 2 }
 0x1f1   : > { %v273_v49 = vadd.f32 %v272_v48, %v271_v47 }
 0x1f3   : > { %v274_v50 = vrot.slane %v273_v49, 1 }
 0x1f5   : > { %v275_v51 = vadd.f32 %v274_v50, %v273_v49 }
 0x1f7   : > { %378 = vpush %v275_v51 }
 0x228   : > { %s379_s7 = spop %378 }
 0x229   : > { %v277_v52 = vstv %s379_s7 }
 0x22a   : > { %278 = vst [vmem:[%s177_s4] sm:$0xff] %v277_v52 }
 0x22b   : > { %443 = shalt.err (!%p440_p3)
}
 0x22c   : > { %s444_s24 = scalar_lea.hbm %s580_s16, 128  ;;  %s448_s27 = scalar_lea.hbm %s622_s2, 256 }
 0x22d   : > { %p445_p4 = scmp.ne.s32.totalorder %s580_s16, %s444_s24  ;;  %p449_p9 = scmp.lt.u32.totalorder %s580_s16, %s622_s2 }
 0x22e   : > { %p450_p10 = scmp.lt.u32.totalorder %s448_s27, %s444_s24  ;;  %p452_p12 = scmp.lt.u32.totalorder %s444_s24, %s580_s16 }
 0x22f   : > { %p446_p7 = pnand %p445_p4, %p549_p5 }
 0x230   : > { %p451_p11 = por %p450_p10, %p449_p9 }
 0x231   : > { %p447_p8 = pneg %p446_p7 }
 0x232   : > { %p453_p13 = por %p452_p12, %p451_p11 }
 0x234   : > { %p454_p0 = pnand %p453_p13, %p447_p8 }
 0x236   : > { %457 = shalt.err (!%p454_p0)
}
 0x237   : > { %380 = dma.vmem_to_hbm [thread:$0]  (%p549_p5), %s575_s5, 128, %s580_s16, %s280_s17  }
 0x238 PF: > { %p386_p1 = scmp.ge.s32.totalorder %s492_s12, 2  ;;  %s305_s30 = sand.u32 1, %s480_s9  }
 0x239   : > { %s306_s3 = scalar_lea.sflag [#allocation3], %s305_s30 }
 0x23a   : > { %p383_p2 = pnand %p386_p1, %p553_p6 }
 0x23c   : > { %475 = dma.done.wait (!%p383_p2), %s306_s3, 128  }
 0x23d   : > { %477 = vsyncadd (!%p383_p2), %s306_s3, 4294967168  ;;  %p12_p3 = scmp.ge.s32.totalorder %s536_s15, 4   ;;  %s625_s9 = smov %s484_s10 }
 0x23e   : > { %s626_s10 = smov %s488_s11  ;;  %s627_s11 = smov %s547_s18 }
 0x23f   : > { %s628_s12 = smov %s536_s15  ;;  %14 = sbr.rel (!%p12_p3) target bundleno = 3 (0x3), region = 66 }
 0x246   :  { %311 = vsyncpa [#allocation3], 1 }
 0x247   :  { %313 = vsyncpa [#allocation3 + $0x1], 1 }

</bundles_post_ra>
